<compile_context>
chip_gen: v5e
topology: v5e:2x2
jax: 0.10.0
libtpu: 0.0.40
codegen_flags: <defaults>
</compile_context>

<pallas_src>
from functools import partial

import jax
import jax.numpy as jnp
import numpy as np
from jax.experimental import pallas as pl
from jax.experimental.pallas import tpu as pltpu

SEQ = 30                        # seq_len_human
PAD_SEQ = 32                    # SEQ padded to a sublane multiple
PRE = 32                        # HIDDEN_DIM_PRE_ATTN_LSTM
HIDDEN = 64                     # HIDDEN_DIM_POST_ATTN_LSTM == hidden_size
FEAT = 2 * PRE                  # per-step input feature size (bidirectional pre-attn LSTM)
ATTN_IN = (FEAT + HIDDEN) * SEQ     # 3840 (kept only for module-faithful init / reference)
OUTPUT_SIZE = 13                # output_size (small synthetic date-character vocab)

LANE = 128                      # TPU lane width; each gate / head gets a 128-lane slot
NEG_MASK = -1e30                # masks padded output-head logits for log_softmax


def attn_decoder_kernel(
    # inputs (all constant across the decode-step grid axis -> DMA'd to VMEM once)
    x_seq_ref,    # (PAD_SEQ, LANE)   f32  input sequence, rows[:30] x lanes[:64] valid
    h0_ref,       # (1, LANE)         f32  initial hidden in lanes [0:HIDDEN], zeros elsewhere
    w_gates_ref,  # (2*LANE, 4*LANE)  f32  fused GRU gate weights (see prepare_params)
    bias_ref,     # (1, 5*LANE)       f32  slots: r(b_ir+b_hr), z(b_iz+b_hz), b_in, b_hn, out bias
    w_out_ref,    # (LANE, LANE)      f32  output head, rows[:HIDDEN] x cols[:OUTPUT_SIZE] valid
    # outputs
    out_ref,      # (1, 1, LANE)      per-step log-probs in lanes [0:OUTPUT_SIZE]
    h_out_ref,    # (1, LANE)         final hidden in lanes [0:HIDDEN] (same block every step)
    # scratch
    lhs_scr,      # (1, 2*LANE)       matmul LHS: lanes[0:128]=attn_applied, [128:256]=hidden
):
    t = pl.program_id(0)
    bias = bias_ref[...]                                     # (1, 640)

    @pl.when(t == 0)
    def _():
        # Attention weights are identically 1.0 (softmax over the singleton torch dim),
        # so attn_applied = sum over the sequence.  It is step-invariant: compute once
        # and keep it resident in the LHS scratch for every decode step.
        lhs_scr[:, 0:LANE] = jnp.sum(x_seq_ref[...], axis=0, keepdims=True)
        lhs_scr[:, LANE:2 * LANE] = h0_ref[...]

    h_pad = lhs_scr[:, LANE:2 * LANE]                        # (1, 128); padded lanes stay 0

    # ---- single fused GRU gate matmul: [x | h] (1,256) @ (256, 512).
    # Slot 0 = gi_r + gh_r, slot 1 = gi_z + gh_z, slot 2 = gi_n, slot 3 = gh_n.
    g = jnp.dot(lhs_scr[...], w_gates_ref[...], preferred_element_type=jnp.float32)  # (1, 512)

    r = jax.nn.sigmoid(g[:, 0:LANE] + bias[:, 0:LANE])
    z = jax.nn.sigmoid(g[:, LANE:2 * LANE] + bias[:, LANE:2 * LANE])
    n = jnp.tanh(
        g[:, 2 * LANE:3 * LANE] + bias[:, 2 * LANE:3 * LANE]
        + r * (g[:, 3 * LANE:4 * LANE] + bias[:, 3 * LANE:4 * LANE])
    )
    # Padded lanes: r = z = 0.5, n = 0, h_pad = 0  =>  h_new padded lanes stay exactly 0.
    h_new = (1.0 - z) * n + z * h_pad                        # (1, 128)

    lhs_scr[:, LANE:2 * LANE] = h_new                        # carry hidden to the next step
    h_out_ref[...] = h_new                                   # constant block -> written back once

    # ---- output head: Linear(64 -> output_size) + log_softmax over the real 13 lanes.
    logits = (
        jnp.dot(h_new, w_out_ref[...], preferred_element_type=jnp.float32)
        + bias[:, 4 * LANE:5 * LANE]                         # real bias in [:13], NEG_MASK elsewhere
    )                                                        # (1, 128)
    m = jnp.max(logits, axis=1, keepdims=True)
    shifted = logits - m
    lse = jnp.log(jnp.sum(jnp.exp(shifted), axis=1, keepdims=True))
    out_ref[...] = (shifted - lse)[None]                     # (1, 1, 128), lane-dense store


def init_params(key):
    """Deterministic parameter init mirroring the module's __init__ shapes."""
    ks = jax.random.split(key, 8)

    def unif(k, shape, fan_in):
        bound = 1.0 / np.sqrt(fan_in)
        return jax.random.uniform(k, shape, jnp.float32, -bound, bound)

    return {
        "W_attn": unif(ks[0], (SEQ, ATTN_IN), ATTN_IN),          # Linear(3840, 30) (dead wrt output)
        "b_attn": unif(ks[1], (SEQ,), ATTN_IN),
        "W_ih":   unif(ks[2], (3 * HIDDEN, HIDDEN), HIDDEN),     # GRU weight_ih_l0 (r, z, n)
        "W_hh":   unif(ks[3], (3 * HIDDEN, HIDDEN), HIDDEN),     # GRU weight_hh_l0
        "b_ih":   unif(ks[4], (3 * HIDDEN,), HIDDEN),
        "b_hh":   unif(ks[5], (3 * HIDDEN,), HIDDEN),
        "W_out":  unif(ks[6], (OUTPUT_SIZE, HIDDEN), HIDDEN),    # Linear(64, output_size)
        "b_out":  unif(ks[7], (OUTPUT_SIZE,), HIDDEN),
    }


def prepare_params(params):
    """One-time weight glue, hoisted out of the decode path.

    Fused gate RHS layout (2*LANE rows = LHS lanes, 4*LANE cols = gate slots):
      rows [0:64]    <- W_ih.T   (LHS lanes 0:64  hold attn_applied)
      rows [128:192] <- W_hh.T   (LHS lanes 128:192 hold hidden)
      slot 0 = r (W_ih_r stacked over W_hh_r), slot 1 = z (stacked),
      slot 2 = n-from-input only, slot 3 = n-from-hidden only.
    The attention Linear (W_attn / b_attn) is intentionally not packed: softmax over the
    singleton dim makes it dead with respect to the forward output.
    """
    W_ih = np.asarray(params["W_ih"], np.float32)
    W_hh = np.asarray(params["W_hh"], np.float32)
    b_ih = np.asarray(params["b_ih"], np.float32)
    b_hh = np.asarray(params["b_hh"], np.float32)

    w_gates = np.zeros((2 * LANE, 4 * LANE), np.float32)
    for gate, slot in ((0, 0), (1, 1)):                      # r, z: input+hidden share a slot
        w_gates[0:HIDDEN, slot * LANE:slot * LANE + HIDDEN] = W_ih[gate * HIDDEN:(gate + 1) * HIDDEN].T
        w_gates[LANE:LANE + HIDDEN, slot * LANE:slot * LANE + HIDDEN] = W_hh[gate * HIDDEN:(gate + 1) * HIDDEN].T
    w_gates[0:HIDDEN, 2 * LANE:2 * LANE + HIDDEN] = W_ih[2 * HIDDEN:].T          # gi_n
    w_gates[LANE:LANE + HIDDEN, 3 * LANE:3 * LANE + HIDDEN] = W_hh[2 * HIDDEN:].T  # gh_n

    bias = np.zeros((1, 5 * LANE), np.float32)
    bias[0, 0:HIDDEN] = b_ih[:HIDDEN] + b_hh[:HIDDEN]
    bias[0, LANE:LANE + HIDDEN] = b_ih[HIDDEN:2 * HIDDEN] + b_hh[HIDDEN:2 * HIDDEN]
    bias[0, 2 * LANE:2 * LANE + HIDDEN] = b_ih[2 * HIDDEN:]
    bias[0, 3 * LANE:3 * LANE + HIDDEN] = b_hh[2 * HIDDEN:]
    bias[0, 4 * LANE:5 * LANE] = NEG_MASK
    bias[0, 4 * LANE:4 * LANE + OUTPUT_SIZE] = np.asarray(params["b_out"], np.float32)

    w_out = np.zeros((LANE, LANE), np.float32)
    w_out[:HIDDEN, :OUTPUT_SIZE] = np.asarray(params["W_out"], np.float32).T

    return {
        "w_gates": jnp.asarray(w_gates),
        "bias": jnp.asarray(bias),
        "w_out": jnp.asarray(w_out),
    }


@partial(jax.jit, static_argnames=("num_steps",))
def attn_decoder_decode(inp, hidden, prepped, num_steps=1):
    """Run `num_steps` chained forward steps in ONE pallas_call.

    inp: (30, 1, 64) f32 encoder outputs (step-invariant), hidden: (1, 1, 64) f32.
    Returns (log_probs (num_steps, OUTPUT_SIZE), final_hidden (1, 1, 64)).
    """
    x_pad = jnp.zeros((PAD_SEQ, LANE), jnp.float32).at[:SEQ, :FEAT].set(
        inp.reshape(SEQ, FEAT).astype(jnp.float32))
    h0 = jnp.zeros((1, LANE), jnp.float32).at[:, :HIDDEN].set(
        hidden.reshape(1, HIDDEN).astype(jnp.float32))

    out_pad, h_final = pl.pallas_call(
        attn_decoder_kernel,
        grid=(num_steps,),
        out_shape=(
            jax.ShapeDtypeStruct((num_steps, 1, LANE), jnp.float32),
            jax.ShapeDtypeStruct((1, LANE), jnp.float32),
        ),
        in_specs=[
            pl.BlockSpec((PAD_SEQ, LANE), lambda t: (0, 0)),         # x_seq  (resident)
            pl.BlockSpec((1, LANE), lambda t: (0, 0)),               # h0     (resident)
            pl.BlockSpec((2 * LANE, 4 * LANE), lambda t: (0, 0)),    # w_gates(resident)
            pl.BlockSpec((1, 5 * LANE), lambda t: (0, 0)),           # bias   (resident)
            pl.BlockSpec((LANE, LANE), lambda t: (0, 0)),            # w_out  (resident)
        ],
        out_specs=(
            pl.BlockSpec((1, 1, LANE), lambda t: (t, 0, 0)),         # per-step log-probs
            pl.BlockSpec((1, LANE), lambda t: (0, 0)),               # final hidden
        ),
        scratch_shapes=[pltpu.VMEM((1, 2 * LANE), jnp.float32)],     # [attn_applied | hidden] carry
        compiler_params=pltpu.CompilerParams(
            dimension_semantics=("arbitrary",)),                     # recurrent step axis
    )(x_pad, h0, prepped["w_gates"], prepped["bias"], prepped["w_out"])

    return out_pad[:, 0, :OUTPUT_SIZE], h_final[:, :HIDDEN].reshape(1, 1, HIDDEN)


def attn_decoder_forward(inp, hidden, time_step, prepped):
    """Single-step forward matching AttnDecoderRNN.forward(input, hidden, time_step)."""
    del time_step  # unused by the module's forward math
    return attn_decoder_decode(inp, hidden, prepped, num_steps=1)


# ----------------------------- pure-JAX reference ----------------------------------
def reference_forward(inp, hidden, params):
    """Literal replica of the PyTorch forward (attention linear included)."""
    h = hidden[0]                                                                    # (1, 64)
    cat = jnp.stack([jnp.concatenate([inp[i], h], axis=1) for i in range(SEQ)])      # (30, 1, 128)
    logits = cat.reshape(1, -1) @ params["W_attn"].T + params["b_attn"]              # (1, 30)
    attn_w = jax.nn.softmax(logits.reshape(1, 1, SEQ), axis=1)                       # ones (dim 1 size 1)
    attn_applied = jnp.einsum("bij,bjk->bik", attn_w, inp.reshape(1, SEQ, FEAT))     # (1, 1, 64)
    x = attn_applied[0]
    gi = x @ params["W_ih"].T + params["b_ih"]
    gh = h @ params["W_hh"].T + params["b_hh"]
    r = jax.nn.sigmoid(gi[:, :HIDDEN] + gh[:, :HIDDEN])
    z = jax.nn.sigmoid(gi[:, HIDDEN:2 * HIDDEN] + gh[:, HIDDEN:2 * HIDDEN])
    n = jnp.tanh(gi[:, 2 * HIDDEN:] + r * gh[:, 2 * HIDDEN:])
    h_new = (1.0 - z) * n + z * h
    out = jax.nn.log_softmax(h_new @ params["W_out"].T + params["b_out"], axis=1)
    return out, h_new.reshape(1, 1, HIDDEN)


def reference_decode(inp, hidden, params, num_steps):
    outs, h = [], hidden
    for _ in range(num_steps):
        o, h = reference_forward(inp, h, params)
        outs.append(o)
    return jnp.concatenate(outs, axis=0), h


if __name__ == "__main__":
    key = jax.random.PRNGKey(0)
    k_param, k_in, k_h = jax.random.split(key, 3)

    params = init_params(k_param)
    prepped = prepare_params(params)    # one-time weight glue (reused every decode)

    inp = jax.random.normal(k_in, (SEQ, 1, FEAT), jnp.float32) * 0.5     # (30, 1, 64)
    hidden = jax.random.normal(k_h, (1, 1, HIDDEN), jnp.float32) * 0.1   # (1, 1, 64)

    # --- single forward step (exact module semantics) ---
    out1, h1 = attn_decoder_forward(inp, hidden, 0, prepped)
    out1 = jax.block_until_ready(out1)
    h1 = jax.block_until_ready(h1)
    ref_out1, ref_h1 = reference_forward(inp, hidden, params)
    np.testing.assert_allclose(np.asarray(out1), np.asarray(ref_out1), rtol=1e-4, atol=1e-5)
    np.testing.assert_allclose(np.asarray(h1), np.asarray(ref_h1), rtol=1e-4, atol=1e-5)

    # --- fused multi-step decode: one pallas_call, weights stay VMEM-resident ---
    T = 8
    out_seq, h_T = attn_decoder_decode(inp, hidden, prepped, num_steps=T)
    out_seq = jax.block_until_ready(out_seq)
    h_T = jax.block_until_ready(h_T)
    ref_seq, ref_hT = reference_decode(inp, hidden, params, T)
    np.testing.assert_allclose(np.asarray(out_seq), np.asarray(ref_seq), rtol=5e-4, atol=5e-5)
    np.testing.assert_allclose(np.asarray(h_T), np.asarray(ref_hT), rtol=5e-4, atol=5e-5)

    print("KERNEL_OK")
</pallas_src>

<mosaic_0001>
module attributes {stable_mosaic.version = 11 : i64} {
  func.func @attn_decoder_kernel(%arg0: i32, %arg1: memref<32x128xf32, #tpu.memory_space<vmem>>, %arg2: memref<1x128xf32, #tpu.memory_space<vmem>>, %arg3: memref<256x512xf32, #tpu.memory_space<vmem>>, %arg4: memref<1x640xf32, #tpu.memory_space<vmem>>, %arg5: memref<128x128xf32, #tpu.memory_space<vmem>>, %arg6: memref<1x1x128xf32, #tpu.memory_space<vmem>>, %arg7: memref<1x128xf32, #tpu.memory_space<vmem>>, %arg8: memref<1x256xf32, #tpu.memory_space<vmem>>) attributes {dimension_semantics = [#tpu.dimension_semantics<arbitrary>], iteration_bounds = array<i64: 1>, scalar_prefetch = 0 : i64, scratch_operands = 1 : i64, tpu.core_type = #tpu.core_type<tc>, window_params = [{pipeline_mode = #tpu.pipeline_mode<synchronous>, transform_indices = @transform_0, window_bounds = array<i64: 32, 128>}, {pipeline_mode = #tpu.pipeline_mode<synchronous>, transform_indices = @transform_1, window_bounds = array<i64: 1, 128>}, {pipeline_mode = #tpu.pipeline_mode<synchronous>, transform_indices = @transform_2, window_bounds = array<i64: 256, 512>}, {pipeline_mode = #tpu.pipeline_mode<synchronous>, transform_indices = @transform_3, window_bounds = array<i64: 1, 640>}, {pipeline_mode = #tpu.pipeline_mode<synchronous>, transform_indices = @transform_4, window_bounds = array<i64: 128, 128>}, {transform_indices = @transform_5, window_bounds = array<i64: 1, 1, 128>}, {pipeline_mode = #tpu.pipeline_mode<synchronous>, transform_indices = @transform_6, window_bounds = array<i64: 1, 128>}]} {
    %c0 = arith.constant 0 : index
    %c0_0 = arith.constant 0 : index
    %0 = vector.load %arg4[%c0, %c0_0] : memref<1x640xf32, #tpu.memory_space<vmem>>, vector<1x640xf32>
    %c0_i32 = arith.constant 0 : i32
    %1 = arith.cmpi eq, %arg0, %c0_i32 : i32
    %2 = arith.extui %1 : i1 to i32
    %c0_i32_1 = arith.constant 0 : i32
    %3 = arith.cmpi ne, %2, %c0_i32_1 : i32
    scf.if %3 {
      %c0_22 = arith.constant 0 : index
      %c0_23 = arith.constant 0 : index
      %56 = vector.load %arg1[%c0_22, %c0_23] : memref<32x128xf32, #tpu.memory_space<vmem>>, vector<32x128xf32>
      %cst_24 = arith.constant dense<0.000000e+00> : vector<128xf32>
      %57 = vector.multi_reduction <add>, %56, %cst_24 [0] : vector<32x128xf32> to vector<128xf32>
      %58 = vector.shape_cast %57 : vector<128xf32> to vector<1x128xf32>
      %c0_25 = arith.constant 0 : index
      %c0_26 = arith.constant 0 : index
      %59 = vector.load %arg8[%c0_25, %c0_26] : memref<1x256xf32, #tpu.memory_space<vmem>>, vector<1x128xf32>
      tpu.vector_store %arg8[%c0_25, %c0_26], %58 {strides = array<i32>} : memref<1x256xf32, #tpu.memory_space<vmem>>, vector<1x128xf32>,
      %c0_27 = arith.constant 0 : index
      %c0_28 = arith.constant 0 : index
      %60 = vector.load %arg2[%c0_27, %c0_28] : memref<1x128xf32, #tpu.memory_space<vmem>>, vector<1x128xf32>
      %c0_29 = arith.constant 0 : index
      %c128_30 = arith.constant 128 : index
      %61 = vector.load %arg8[%c0_29, %c128_30] : memref<1x256xf32, #tpu.memory_space<vmem>>, vector<1x128xf32>
      tpu.vector_store %arg8[%c0_29, %c128_30], %60 {strides = array<i32>} : memref<1x256xf32, #tpu.memory_space<vmem>>, vector<1x128xf32>,
    } else {
    }
    %c0_2 = arith.constant 0 : index
    %c128 = arith.constant 128 : index
    %4 = vector.load %arg8[%c0_2, %c128] : memref<1x256xf32, #tpu.memory_space<vmem>>, vector<1x128xf32>
    %c0_3 = arith.constant 0 : index
    %c0_4 = arith.constant 0 : index
    %5 = vector.load %arg8[%c0_3, %c0_4] : memref<1x256xf32, #tpu.memory_space<vmem>>, vector<1x256xf32>
    %c0_5 = arith.constant 0 : index
    %c0_6 = arith.constant 0 : index
    %6 = vector.load %arg3[%c0_5, %c0_6] : memref<256x512xf32, #tpu.memory_space<vmem>>, vector<256x512xf32>
    %cst = arith.constant dense<0.000000e+00> : vector<1x512xf32>
    %7 = tpu.matmul %5, %6, %cst {dimension_numbers = #tpu.dot_dimension_numbers<[1], [0], [0], [1], [0, 0, 1, 1], [], []>} : vector<1x256xf32>, vector<256x512xf32>, vector<1x512xf32> -> vector<1x512xf32>
    %8 = vector.extract_strided_slice %7 {offsets = [0, 0], sizes = [1, 128], strides = [1, 1]} : vector<1x512xf32> to vector<1x128xf32>
    %9 = vector.extract_strided_slice %0 {offsets = [0, 0], sizes = [1, 128], strides = [1, 1]} : vector<1x640xf32> to vector<1x128xf32>
    %10 = arith.addf %8, %9 : vector<1x128xf32>
    %11 = arith.negf %10 : vector<1x128xf32>
    %12 = math.exp %11 : vector<1x128xf32>
    %cst_7 = arith.constant 1.000000e+00 : f32
    %13 = vector.broadcast %cst_7 : f32 to vector<1x128xf32>
    %14 = arith.addf %13, %12 : vector<1x128xf32>
    %15 = arith.divf %13, %14 : vector<1x128xf32>
    %16 = vector.extract_strided_slice %7 {offsets = [0, 128], sizes = [1, 128], strides = [1, 1]} : vector<1x512xf32> to vector<1x128xf32>
    %17 = vector.extract_strided_slice %0 {offsets = [0, 128], sizes = [1, 128], strides = [1, 1]} : vector<1x640xf32> to vector<1x128xf32>
    %18 = arith.addf %16, %17 : vector<1x128xf32>
    %19 = arith.negf %18 : vector<1x128xf32>
    %20 = math.exp %19 : vector<1x128xf32>
    %cst_8 = arith.constant 1.000000e+00 : f32
    %21 = vector.broadcast %cst_8 : f32 to vector<1x128xf32>
    %22 = arith.addf %21, %20 : vector<1x128xf32>
    %23 = arith.divf %21, %22 : vector<1x128xf32>
    %24 = vector.extract_strided_slice %7 {offsets = [0, 256], sizes = [1, 128], strides = [1, 1]} : vector<1x512xf32> to vector<1x128xf32>
    %25 = vector.extract_strided_slice %0 {offsets = [0, 256], sizes = [1, 128], strides = [1, 1]} : vector<1x640xf32> to vector<1x128xf32>
    %26 = arith.addf %24, %25 : vector<1x128xf32>
    %27 = vector.extract_strided_slice %7 {offsets = [0, 384], sizes = [1, 128], strides = [1, 1]} : vector<1x512xf32> to vector<1x128xf32>
    %28 = vector.extract_strided_slice %0 {offsets = [0, 384], sizes = [1, 128], strides = [1, 1]} : vector<1x640xf32> to vector<1x128xf32>
    %29 = arith.addf %27, %28 : vector<1x128xf32>
    %30 = arith.mulf %15, %29 : vector<1x128xf32>
    %31 = arith.addf %26, %30 : vector<1x128xf32>
    %32 = math.tanh %31 : vector<1x128xf32>
    %cst_9 = arith.constant 1.000000e+00 : f32
    %33 = vector.broadcast %cst_9 : f32 to vector<1x128xf32>
    %34 = arith.subf %33, %23 : vector<1x128xf32>
    %35 = arith.mulf %34, %32 : vector<1x128xf32>
    %36 = arith.mulf %23, %4 : vector<1x128xf32>
    %37 = arith.addf %35, %36 : vector<1x128xf32>
    %c0_10 = arith.constant 0 : index
    %c128_11 = arith.constant 128 : index
    %38 = vector.load %arg8[%c0_10, %c128_11] : memref<1x256xf32, #tpu.memory_space<vmem>>, vector<1x128xf32>
    tpu.vector_store %arg8[%c0_10, %c128_11], %37 {strides = array<i32>} : memref<1x256xf32, #tpu.memory_space<vmem>>, vector<1x128xf32>,
    %c0_12 = arith.constant 0 : index
    %c0_13 = arith.constant 0 : index
    %39 = vector.load %arg7[%c0_12, %c0_13] : memref<1x128xf32, #tpu.memory_space<vmem>>, vector<1x128xf32>
    tpu.vector_store %arg7[%c0_12, %c0_13], %37 {strides = array<i32>} : memref<1x128xf32, #tpu.memory_space<vmem>>, vector<1x128xf32>,
    %c0_14 = arith.constant 0 : index
    %c0_15 = arith.constant 0 : index
    %40 = vector.load %arg5[%c0_14, %c0_15] : memref<128x128xf32, #tpu.memory_space<vmem>>, vector<128x128xf32>
    %cst_16 = arith.constant dense<0.000000e+00> : vector<1x128xf32>
    %41 = tpu.matmul %37, %40, %cst_16 {dimension_numbers = #tpu.dot_dimension_numbers<[1], [0], [0], [1], [0, 0, 1, 1], [], []>} : vector<1x128xf32>, vector<128x128xf32>, vector<1x128xf32> -> vector<1x128xf32>
    %42 = vector.extract_strided_slice %0 {offsets = [0, 512], sizes = [1, 128], strides = [1, 1]} : vector<1x640xf32> to vector<1x128xf32>
    %43 = arith.addf %41, %42 : vector<1x128xf32>
    %cst_17 = arith.constant dense<0xFF800000> : vector<1xf32>
    %44 = vector.multi_reduction <maximumf>, %43, %cst_17 [1] : vector<1x128xf32> to vector<1xf32>
    %45 = vector.shape_cast %44 : vector<1xf32> to vector<1x1xf32>
    %46 = vector.broadcast %45 : vector<1x1xf32> to vector<1x128xf32>
    %47 = arith.subf %43, %46 : vector<1x128xf32>
    %48 = math.exp %47 : vector<1x128xf32>
    %cst_18 = arith.constant dense<0.000000e+00> : vector<1xf32>
    %49 = vector.multi_reduction <add>, %48, %cst_18 [1] : vector<1x128xf32> to vector<1xf32>
    %50 = vector.shape_cast %49 : vector<1xf32> to vector<1x1xf32>
    %51 = math.log %50 : vector<1x1xf32>
    %52 = vector.broadcast %51 : vector<1x1xf32> to vector<1x128xf32>
    %53 = arith.subf %47, %52 : vector<1x128xf32>
    %54 = vector.shape_cast %53 : vector<1x128xf32> to vector<1x1x128xf32>
    %c0_19 = arith.constant 0 : index
    %c0_20 = arith.constant 0 : index
    %c0_21 = arith.constant 0 : index
    %55 = vector.load %arg6[%c0_19, %c0_20, %c0_21] : memref<1x1x128xf32, #tpu.memory_space<vmem>>, vector<1x1x128xf32>
    tpu.vector_store %arg6[%c0_19, %c0_20, %c0_21], %54 {strides = array<i32>} : memref<1x1x128xf32, #tpu.memory_space<vmem>>, vector<1x1x128xf32>,
    return
  }
  func.func @transform_0(%arg0: i32) -> (i32, i32) {
    %c0_i32 = arith.constant 0 : i32
    %c0_i32_0 = arith.constant 0 : i32
    %c0_i32_1 = arith.constant 0 : i32
    return %c0_i32, %c0_i32_0 : i32, i32
  }
  func.func @transform_1(%arg0: i32) -> (i32, i32) {
    %c0_i32 = arith.constant 0 : i32
    %c0_i32_0 = arith.constant 0 : i32
    %c0_i32_1 = arith.constant 0 : i32
    return %c0_i32, %c0_i32_0 : i32, i32
  }
  func.func @transform_2(%arg0: i32) -> (i32, i32) {
    %c0_i32 = arith.constant 0 : i32
    %c0_i32_0 = arith.constant 0 : i32
    %c0_i32_1 = arith.constant 0 : i32
    return %c0_i32, %c0_i32_0 : i32, i32
  }
  func.func @transform_3(%arg0: i32) -> (i32, i32) {
    %c0_i32 = arith.constant 0 : i32
    %c0_i32_0 = arith.constant 0 : i32
    %c0_i32_1 = arith.constant 0 : i32
    return %c0_i32, %c0_i32_0 : i32, i32
  }
  func.func @transform_4(%arg0: i32) -> (i32, i32) {
    %c0_i32 = arith.constant 0 : i32
    %c0_i32_0 = arith.constant 0 : i32
    %c0_i32_1 = arith.constant 0 : i32
    return %c0_i32, %c0_i32_0 : i32, i32
  }
  func.func @transform_5(%arg0: i32) -> (i32, i32, i32) {
    %c0_i32 = arith.constant 0 : i32
    %c0_i32_0 = arith.constant 0 : i32
    %c0_i32_1 = arith.constant 0 : i32
    return %arg0, %c0_i32, %c0_i32_0 : i32, i32, i32
  }
  func.func @transform_6(%arg0: i32) -> (i32, i32) {
    %c0_i32 = arith.constant 0 : i32
    %c0_i32_0 = arith.constant 0 : i32
    %c0_i32_1 = arith.constant 0 : i32
    return %c0_i32, %c0_i32_0 : i32, i32
  }
}

</mosaic_0001>

<bundles_post_ra>
// kernel: attn_decoder_decode.1
= control target key start
LH: loop header
LB: loop body
LE: loop exit
PB: predicated region body
PF: predicated region fallthrough
CT: control target
= control target key end

     0   :  { %12 = vsyncpa [#allocation4], 0  ;;  %s672_s0 = inlined_call_operand.vmem [shape: f32[32,128], index: 0, kind: input, shape index: {}]   ;;  %s673_s1 = inlined_call_operand.vmem [shape: f32[1,128], index: 1, kind: input, shape index: {}]   ;;  %s674_s2 = inlined_call_operand.hbm [shape: f32[256,512], index: 2, kind: input, shape index: {}]   ;;  %s675_s3 = inlined_call_operand.vmem [shape: f32[1,640], index: 3, kind: input, shape index: {}]   ;;  %s676_s4 = inlined_call_operand.hbm [shape: f32[128,128], index: 4, kind: input, shape index: {}]   ;;  %s677_s5 = inlined_call_operand.vmem [shape: f32[1,1,128], index: 5, kind: output, shape index: {0}]   ;;  %s678_s6 = inlined_call_operand.vmem [shape: f32[1,128], index: 6, kind: output, shape index: {1}]  }
   0x1   :  { %s22_s23 = sshll.u32 %s674_s2, 4  ;;  %s23_s23 = int_to_ptr.hbm [resolvable:$true] %s22_s23 }
   0x2   :  { %13 = vsyncpa [#allocation6], 0  ;;  %s572_s24 = smov [#allocation3]   ;;  %s37_s28 = sshll.u32 %s676_s4, 4  ;;  %s38_s28 = int_to_ptr.hbm [resolvable:$true] %s37_s28 }
   0x3   :  { %s24_s25 = sshll.u32 %s572_s24, 4  ;;  %s573_s29 = smov 512   ;;  %s25_s25 = int_to_ptr.vmem [resolvable:$true] %s24_s25 }
   0x4   :  { %s574_s30 = smov 32   ;;  %s575_s7 = smov [#allocation5]  }
   0x5   :  { %30 = dma.hbm_to_vmem [thread:$0]  %s23_s23, 16384, %s25_s25, [#allocation4], %s573_s29, %s573_s29, %s574_s30  }
   0x6   :  { %s39_s8 = sshll.u32 %s575_s7, 4  ;;  %s576_s9 = smov 128   ;;  %s40_s8 = int_to_ptr.vmem [resolvable:$true] %s39_s8 }
   0x7   :  { %s577_s10 = smov 8  }
   0x8   :  { %45 = dma.hbm_to_vmem [thread:$0]  %s38_s28, 2048, %s40_s8, [#allocation6], %s576_s9, %s576_s9, %s577_s10  }
   0x9   :  { %568 = dma.done.wait [#allocation4], 16384  }
   0xa   :  { %569 = vsyncadd [#allocation4], 4294950912 }
   0xb   :  { %570 = dma.done.wait [#allocation6], 2048  }
   0xc   :  { %571 = vsyncadd [#allocation6], 4294965248  ;;  %v141_v0 = vld [vmem:[#allocation3 + $0x1e0] sm:$0xff]  ;;  %v142_v2 = vld [vmem:[#allocation3 + $0x1e8] sm:$0xff]  ;;  %v72_v38 = vlaneseq  ;;  %vm474_vm9 = vcmask 1040384  }
   0xd   :  { %v205_v1 = vld [vmem:[#allocation3 + $0x3e0] sm:$0xff]  ;;  %214 = vmatpush.msra.mxu0 %v141_v0  ;;  %v206_v3 = vld [vmem:[#allocation3 + $0x3e8] sm:$0xff]  ;;  %254 = vmatpush.msra.mxu2 %v142_v2  ;;  %v77_v56 = vld [vmem:[%s673_s1] sm:$0x1] }
   0xe   :  { %234 = vmatpush.msra.mxu1 %v205_v1  ;;  %v137_v4 = vld [vmem:[#allocation3 + $0x1c0] sm:$0xff]  ;;  %274 = vmatpush.msra.mxu3 %v206_v3  ;;  %v138_v6 = vld [vmem:[#allocation3 + $0x1c8] sm:$0xff]  ;;  %vm619_vm0 = vcmp.lt.s32.totalorder %v72_v38, 128  ;;  %v62_v59 = vld [vmem:[%s672_s0 + $0x18] sm:$0xff] }
   0xf   :  { %v201_v5 = vld [vmem:[#allocation3 + $0x3c0] sm:$0xff]  ;;  %v202_v7 = vld [vmem:[#allocation3 + $0x3c8] sm:$0xff]  ;;  %215 = vmatpush.msra.mxu0 %v137_v4  ;;  %255 = vmatpush.msra.mxu2 %v138_v6  ;;  %78 = vst.msk [vmem:[#allocation2 + $0x1] sm:$0x1] %vm619_vm0, %v77_v56  ;;  %v123_v38 = vld [vmem:[#allocation3 + $0x150] sm:$0xff] }
  0x10   :  { %v133_v8 = vld [vmem:[#allocation3 + $0x1a0] sm:$0xff]  ;;  %235 = vmatpush.msra.mxu1 %v201_v5  ;;  %v134_v10 = vld [vmem:[#allocation3 + $0x1a8] sm:$0xff]  ;;  %275 = vmatpush.msra.mxu3 %v202_v7  ;;  %v111_v56 = vld [vmem:[#allocation3 + $0xf0] sm:$0xff] }
  0x11   :  { %v197_v9 = vld [vmem:[#allocation3 + $0x3a0] sm:$0xff]  ;;  %v198_v11 = vld [vmem:[#allocation3 + $0x3a8] sm:$0xff]  ;;  %216 = vmatpush.msra.mxu0 %v133_v8  ;;  %256 = vmatpush.msra.mxu2 %v134_v10 }
  0x12   :  { %v129_v12 = vld [vmem:[#allocation3 + $0x180] sm:$0xff]  ;;  %236 = vmatpush.msra.mxu1 %v197_v9  ;;  %v130_v14 = vld [vmem:[#allocation3 + $0x188] sm:$0xff]  ;;  %276 = vmatpush.msra.mxu3 %v198_v11 }
  0x13   :  { %v193_v13 = vld [vmem:[#allocation3 + $0x380] sm:$0xff]  ;;  %v194_v15 = vld [vmem:[#allocation3 + $0x388] sm:$0xff]  ;;  %217 = vmatpush.msra.mxu0 %v129_v12  ;;  %257 = vmatpush.msra.mxu2 %v130_v14  ;;  %v144_v12 = vld [vmem:[#allocation3 + $0x1f8] sm:$0xff] }
  0x14   :  { %v125_v16 = vld [vmem:[#allocation3 + $0x160] sm:$0xff]  ;;  %237 = vmatpush.msra.mxu1 %v193_v13  ;;  %v126_v18 = vld [vmem:[#allocation3 + $0x168] sm:$0xff]  ;;  %277 = vmatpush.msra.mxu3 %v194_v15  ;;  %v208_v13 = vld [vmem:[#allocation3 + $0x3f8] sm:$0xff] }
  0x15   :  { %v189_v17 = vld [vmem:[#allocation3 + $0x360] sm:$0xff]  ;;  %v190_v19 = vld [vmem:[#allocation3 + $0x368] sm:$0xff]  ;;  %218 = vmatpush.msra.mxu0 %v125_v16  ;;  %258 = vmatpush.msra.mxu2 %v126_v18  ;;  %v143_v14 = vld [vmem:[#allocation3 + $0x1f0] sm:$0xff] }
  0x16   :  { %v121_v20 = vld [vmem:[#allocation3 + $0x140] sm:$0xff]  ;;  %238 = vmatpush.msra.mxu1 %v189_v17  ;;  %v122_v22 = vld [vmem:[#allocation3 + $0x148] sm:$0xff]  ;;  %278 = vmatpush.msra.mxu3 %v190_v19  ;;  %v207_v15 = vld [vmem:[#allocation3 + $0x3f0] sm:$0xff] }
  0x17   :  { %v185_v21 = vld [vmem:[#allocation3 + $0x340] sm:$0xff]  ;;  %v186_v23 = vld [vmem:[#allocation3 + $0x348] sm:$0xff]  ;;  %219 = vmatpush.msra.mxu0 %v121_v20  ;;  %259 = vmatpush.msra.mxu2 %v122_v22  ;;  %v140_v17 = vld [vmem:[#allocation3 + $0x1d8] sm:$0xff] }
  0x18   :  { %v117_v24 = vld [vmem:[#allocation3 + $0x120] sm:$0xff]  ;;  %239 = vmatpush.msra.mxu1 %v185_v21  ;;  %v118_v26 = vld [vmem:[#allocation3 + $0x128] sm:$0xff]  ;;  %279 = vmatpush.msra.mxu3 %v186_v23  ;;  %v204_v18 = vld [vmem:[#allocation3 + $0x3d8] sm:$0xff] }
  0x19   :  { %v181_v25 = vld [vmem:[#allocation3 + $0x320] sm:$0xff]  ;;  %v182_v27 = vld [vmem:[#allocation3 + $0x328] sm:$0xff]  ;;  %220 = vmatpush.msra.mxu0 %v117_v24  ;;  %260 = vmatpush.msra.mxu2 %v118_v26  ;;  %v139_v19 = vld [vmem:[#allocation3 + $0x1d0] sm:$0xff] }
  0x1a   :  { %v113_v28 = vld [vmem:[#allocation3 + $0x100] sm:$0xff]  ;;  %240 = vmatpush.msra.mxu1 %v181_v25  ;;  %v114_v30 = vld [vmem:[#allocation3 + $0x108] sm:$0xff]  ;;  %280 = vmatpush.msra.mxu3 %v182_v27  ;;  %v203_v20 = vld [vmem:[#allocation3 + $0x3d0] sm:$0xff] }
  0x1b   :  { %v177_v29 = vld [vmem:[#allocation3 + $0x300] sm:$0xff]  ;;  %v178_v31 = vld [vmem:[#allocation3 + $0x308] sm:$0xff]  ;;  %221 = vmatpush.msra.mxu0 %v113_v28  ;;  %261 = vmatpush.msra.mxu2 %v114_v30  ;;  %v136_v22 = vld [vmem:[#allocation3 + $0x1b8] sm:$0xff] }
  0x1c   :  { %v109_v32 = vld [vmem:[#allocation3 + $0xe0] sm:$0xff]  ;;  %241 = vmatpush.msra.mxu1 %v177_v29  ;;  %v110_v34 = vld [vmem:[#allocation3 + $0xe8] sm:$0xff]  ;;  %281 = vmatpush.msra.mxu3 %v178_v31  ;;  %v200_v23 = vld [vmem:[#allocation3 + $0x3b8] sm:$0xff] }
  0x1d   :  { %v173_v33 = vld [vmem:[#allocation3 + $0x2e0] sm:$0xff]  ;;  %v174_v35 = vld [vmem:[#allocation3 + $0x2e8] sm:$0xff]  ;;  %222 = vmatpush.msra.mxu0 %v109_v32  ;;  %262 = vmatpush.msra.mxu2 %v110_v34  ;;  %v135_v24 = vld [vmem:[#allocation3 + $0x1b0] sm:$0xff] }
  0x1e   :  { %v105_v36 = vld [vmem:[#allocation3 + $0xc0] sm:$0xff]  ;;  %242 = vmatpush.msra.mxu1 %v173_v33  ;;  %v106_v39 = vld [vmem:[#allocation3 + $0xc8] sm:$0xff]  ;;  %282 = vmatpush.msra.mxu3 %v174_v35  ;;  %v199_v25 = vld [vmem:[#allocation3 + $0x3b0] sm:$0xff] }
  0x1f   :  { %v169_v37 = vld [vmem:[#allocation3 + $0x2c0] sm:$0xff]  ;;  %v170_v40 = vld [vmem:[#allocation3 + $0x2c8] sm:$0xff]  ;;  %223 = vmatpush.msra.mxu0 %v105_v36  ;;  %263 = vmatpush.msra.mxu2 %v106_v39  ;;  %v132_v27 = vld [vmem:[#allocation3 + $0x198] sm:$0xff] }
  0x20   :  { %v101_v41 = vld [vmem:[#allocation3 + $0xa0] sm:$0xff]  ;;  %243 = vmatpush.msra.mxu1 %v169_v37  ;;  %v102_v43 = vld [vmem:[#allocation3 + $0xa8] sm:$0xff]  ;;  %283 = vmatpush.msra.mxu3 %v170_v40  ;;  %v196_v28 = vld [vmem:[#allocation3 + $0x398] sm:$0xff] }
  0x21   :  { %v165_v42 = vld [vmem:[#allocation3 + $0x2a0] sm:$0xff]  ;;  %v166_v44 = vld [vmem:[#allocation3 + $0x2a8] sm:$0xff]  ;;  %224 = vmatpush.msra.mxu0 %v101_v41  ;;  %264 = vmatpush.msra.mxu2 %v102_v43  ;;  %v131_v29 = vld [vmem:[#allocation3 + $0x190] sm:$0xff] }
  0x22   :  { %v97_v45 = vld [vmem:[#allocation3 + $0x80] sm:$0xff]  ;;  %v98_v47 = vld [vmem:[#allocation3 + $0x88] sm:$0xff]  ;;  %244 = vmatpush.msra.mxu1 %v165_v42  ;;  %284 = vmatpush.msra.mxu3 %v166_v44  ;;  %v195_v30 = vld [vmem:[#allocation3 + $0x390] sm:$0xff] }
  0x23   :  { %v161_v46 = vld [vmem:[#allocation3 + $0x280] sm:$0xff]  ;;  %v162_v48 = vld [vmem:[#allocation3 + $0x288] sm:$0xff]  ;;  %225 = vmatpush.msra.mxu0 %v97_v45  ;;  %265 = vmatpush.msra.mxu2 %v98_v47  ;;  %v128_v32 = vld [vmem:[#allocation3 + $0x178] sm:$0xff] }
  0x24   :  { %v93_v50 = vld [vmem:[#allocation3 + $0x60] sm:$0xff]  ;;  %v61_v54 = vld [vmem:[%s672_s0 + $0x10] sm:$0xff]  ;;  %245 = vmatpush.msra.mxu1 %v161_v46  ;;  %285 = vmatpush.msra.mxu3 %v162_v48  ;;  %v192_v33 = vld [vmem:[#allocation3 + $0x378] sm:$0xff] }
  0x25   :  { %v59_v51 = vld [vmem:[%s672_s0] sm:$0xff]  ;;  %v60_v52 = vld [vmem:[%s672_s0 + $0x8] sm:$0xff]  ;;  %226 = vmatpush.msra.mxu0 %v93_v50  ;;  %v127_v34 = vld [vmem:[#allocation3 + $0x170] sm:$0xff] }
  0x26   :  { %v157_v53 = vld [vmem:[#allocation3 + $0x260] sm:$0xff]  ;;  %v63_v55 = vadd.f32 %v60_v52, %v59_v51  ;;  %v94_v57 = vld [vmem:[#allocation3 + $0x68] sm:$0xff]  ;;  %v191_v35 = vld [vmem:[#allocation3 + $0x370] sm:$0xff] }
  0x27   :  { %v158_v58 = vld [vmem:[#allocation3 + $0x268] sm:$0xff]  ;;  %v89_v60 = vld [vmem:[#allocation3 + $0x40] sm:$0xff]  ;;  %246 = vmatpush.msra.mxu1 %v157_v53  ;;  %266 = vmatpush.msra.mxu2 %v94_v57  ;;  %v124_v36 = vld [vmem:[#allocation3 + $0x158] sm:$0xff] }
  0x28   :  { %v153_v61 = vld [vmem:[#allocation3 + $0x240] sm:$0xff]  ;;  %v64_v62 = vadd.f32 %v63_v55, %v61_v54  ;;  %v90_v63 = vld [vmem:[#allocation3 + $0x48] sm:$0xff]  ;;  %286 = vmatpush.msra.mxu3 %v158_v58  ;;  %227 = vmatpush.msra.mxu0 %v89_v60  ;;  %v188_v37 = vld [vmem:[#allocation3 + $0x358] sm:$0xff] }
  0x29   :  { %v154_v0 = vld [vmem:[#allocation3 + $0x248] sm:$0xff]  ;;  %v85_v1 = vld [vmem:[#allocation3 + $0x20] sm:$0xff]  ;;  %247 = vmatpush.msra.mxu1 %v153_v61  ;;  %267 = vmatpush.msra.mxu2 %v90_v63  ;;  %v187_v39 = vld [vmem:[#allocation3 + $0x350] sm:$0xff] }
  0x2a   :  { %v149_v2 = vld [vmem:[#allocation3 + $0x220] sm:$0xff]  ;;  %v65_v3 = vadd.f32 %v64_v62, %v62_v59  ;;  %v86_v4 = vld [vmem:[#allocation3 + $0x28] sm:$0xff]  ;;  %287 = vmatpush.msra.mxu3 %v154_v0  ;;  %228 = vmatpush.msra.mxu0 %v85_v1  ;;  %v120_v40 = vld [vmem:[#allocation3 + $0x138] sm:$0xff] }
  0x2b   :  { %v150_v5 = vld [vmem:[#allocation3 + $0x228] sm:$0xff]  ;;  %v81_v6 = vld [vmem:[#allocation3] sm:$0xff]  ;;  %248 = vmatpush.msra.mxu1 %v149_v2  ;;  %268 = vmatpush.msra.mxu2 %v86_v4  ;;  %v184_v41 = vld [vmem:[#allocation3 + $0x338] sm:$0xff] }
  0x2c   :  { %v145_v7 = vld [vmem:[#allocation3 + $0x200] sm:$0xff]  ;;  %v66_v8 = vrot.slane %v65_v3, 4  ;;  %v82_v9 = vld [vmem:[#allocation3 + $0x8] sm:$0xff]  ;;  %288 = vmatpush.msra.mxu3 %v150_v5  ;;  %229 = vmatpush.msra.mxu0 %v81_v6  ;;  %v119_v42 = vld [vmem:[#allocation3 + $0x130] sm:$0xff] }
  0x2d   :  { %v146_v10 = vld [vmem:[#allocation3 + $0x208] sm:$0xff]  ;;  %249 = vmatpush.msra.mxu1 %v145_v7  ;;  %269 = vmatpush.msra.mxu2 %v82_v9  ;;  %v183_v43 = vld [vmem:[#allocation3 + $0x330] sm:$0xff]  ;;  %v116_v44 = vld [vmem:[#allocation3 + $0x118] sm:$0xff] }
  0x2e   :  { %v67_v11 = vadd.f32 %v66_v8, %v65_v3  ;;  %289 = vmatpush.msra.mxu3 %v146_v10  ;;  %294 = vmatpush.msrb.mxu0 %v143_v14  ;;  %v180_v45 = vld [vmem:[#allocation3 + $0x318] sm:$0xff]  ;;  %v115_v46 = vld [vmem:[#allocation3 + $0x110] sm:$0xff] }
  0x2f   :  { %334 = vmatpush.msrb.mxu2 %v144_v12  ;;  %314 = vmatpush.msrb.mxu1 %v207_v15  ;;  %v179_v47 = vld [vmem:[#allocation3 + $0x310] sm:$0xff]  ;;  %v112_v48 = vld [vmem:[#allocation3 + $0xf8] sm:$0xff] }
  0x30   :  { %v68_v16 = vrot.slane %v67_v11, 2  ;;  %354 = vmatpush.msrb.mxu3 %v208_v13  ;;  %295 = vmatpush.msrb.mxu0 %v139_v19  ;;  %v176_v50 = vld [vmem:[#allocation3 + $0x2f8] sm:$0xff]  ;;  %v175_v57 = vld [vmem:[#allocation3 + $0x2f0] sm:$0xff] }
  0x31   :  { %335 = vmatpush.msrb.mxu2 %v140_v17  ;;  %315 = vmatpush.msrb.mxu1 %v203_v20  ;;  %v108_v54 = vld [vmem:[#allocation3 + $0xd8] sm:$0xff]  ;;  %v107_v60 = vld [vmem:[#allocation3 + $0xd0] sm:$0xff] }
  0x32   :  { %v69_v21 = vadd.f32 %v68_v16, %v67_v11  ;;  %355 = vmatpush.msrb.mxu3 %v204_v18  ;;  %296 = vmatpush.msrb.mxu0 %v135_v24  ;;  %v172_v55 = vld [vmem:[#allocation3 + $0x2d8] sm:$0xff]  ;;  %v171_v61 = vld [vmem:[#allocation3 + $0x2d0] sm:$0xff] }
  0x33   :  { %336 = vmatpush.msrb.mxu2 %v136_v22  ;;  %316 = vmatpush.msrb.mxu1 %v199_v25  ;;  %v104_v58 = vld [vmem:[#allocation3 + $0xb8] sm:$0xff]  ;;  %v103_v0 = vld [vmem:[#allocation3 + $0xb0] sm:$0xff]  ;;  %v449_v22 = vld [vmem:[#allocation5 + $0x68] sm:$0xff] }
  0x34   :  { %v70_v26 = vrot.slane %v69_v21, 1  ;;  %356 = vmatpush.msrb.mxu3 %v200_v23  ;;  %297 = vmatpush.msrb.mxu0 %v131_v29  ;;  %v168_v59 = vld [vmem:[#allocation3 + $0x2b8] sm:$0xff]  ;;  %v167_v1 = vld [vmem:[#allocation3 + $0x2b0] sm:$0xff] }
  0x35   :  { %337 = vmatpush.msrb.mxu2 %v132_v27  ;;  %317 = vmatpush.msrb.mxu1 %v195_v30  ;;  %v100_v62 = vld [vmem:[#allocation3 + $0x98] sm:$0xff]  ;;  %v99_v4 = vld [vmem:[#allocation3 + $0x90] sm:$0xff] }
  0x36   :  { %v71_v31 = vadd.f32 %v70_v26, %v69_v21  ;;  %357 = vmatpush.msrb.mxu3 %v196_v28  ;;  %298 = vmatpush.msrb.mxu0 %v127_v34  ;;  %v164_v63 = vld [vmem:[#allocation3 + $0x298] sm:$0xff]  ;;  %v163_v5 = vld [vmem:[#allocation3 + $0x290] sm:$0xff]  ;;  %v448_v26 = vld [vmem:[#allocation5 + $0x60] sm:$0xff] }
  0x37   :  { %338 = vmatpush.msrb.mxu2 %v128_v32  ;;  %318 = vmatpush.msrb.mxu1 %v191_v35  ;;  %v96_v2 = vld [vmem:[#allocation3 + $0x78] sm:$0xff]  ;;  %v95_v8 = vld [vmem:[#allocation3 + $0x70] sm:$0xff]  ;;  %v444_v34 = vld [vmem:[#allocation5 + $0x40] sm:$0xff] }
  0x38   :  { %76 = vst.msk [vmem:[#allocation2] sm:$0x1] %vm619_vm0, %v71_v31  ;;  %358 = vmatpush.msrb.mxu3 %v192_v33  ;;  %299 = vmatpush.msrb.mxu0 %v123_v38  ;;  %v160_v3 = vld [vmem:[#allocation3 + $0x278] sm:$0xff]  ;;  %v159_v9 = vld [vmem:[#allocation3 + $0x270] sm:$0xff]  ;;  %v445_v31 = vld [vmem:[#allocation5 + $0x48] sm:$0xff] }
  0x39   :  { %339 = vmatpush.msrb.mxu2 %v124_v36  ;;  %319 = vmatpush.msrb.mxu1 %v187_v39  ;;  %v92_v6 = vld [vmem:[#allocation3 + $0x58] sm:$0xff]  ;;  %v91_v12 = vld [vmem:[#allocation3 + $0x50] sm:$0xff] }
  0x3a   :  { %359 = vmatpush.msrb.mxu3 %v188_v37  ;;  %300 = vmatpush.msrb.mxu0 %v119_v42  ;;  %v156_v7 = vld [vmem:[#allocation3 + $0x258] sm:$0xff]  ;;  %v155_v13 = vld [vmem:[#allocation3 + $0x250] sm:$0xff]  ;;  %v441_v42 = vld [vmem:[#allocation5 + $0x28] sm:$0xff] }
  0x3b   :  { %340 = vmatpush.msrb.mxu2 %v120_v40  ;;  %320 = vmatpush.msrb.mxu1 %v183_v43  ;;  %v88_v10 = vld [vmem:[#allocation3 + $0x38] sm:$0xff]  ;;  %v87_v16 = vld [vmem:[#allocation3 + $0x30] sm:$0xff] }
  0x3c   :  { %360 = vmatpush.msrb.mxu3 %v184_v41  ;;  %301 = vmatpush.msrb.mxu0 %v115_v46  ;;  %v152_v11 = vld [vmem:[#allocation3 + $0x238] sm:$0xff]  ;;  %v151_v17 = vld [vmem:[#allocation3 + $0x230] sm:$0xff] }
  0x3d   :  { %341 = vmatpush.msrb.mxu2 %v116_v44  ;;  %321 = vmatpush.msrb.mxu1 %v179_v47  ;;  %v84_v14 = vld [vmem:[#allocation3 + $0x18] sm:$0xff]  ;;  %v83_v18 = vld [vmem:[#allocation3 + $0x10] sm:$0xff] }
  0x3e   :  { %361 = vmatpush.msrb.mxu3 %v180_v45  ;;  %302 = vmatpush.msrb.mxu0 %v111_v56  ;;  %v148_v15 = vld [vmem:[#allocation3 + $0x218] sm:$0xff]  ;;  %v147_v19 = vld [vmem:[#allocation3 + $0x210] sm:$0xff]  ;;  %v440_v45 = vld [vmem:[#allocation5 + $0x20] sm:$0xff] }
  0x3f   :  { %v80_v51 = vld [vmem:[#allocation2] sm:$0x3]  ;;  %342 = vmatpush.msrb.mxu2 %v112_v48  ;;  %322 = vmatpush.msrb.mxu1 %v175_v57  ;;  %v450_v21 = vld [vmem:[#allocation5 + $0x70] sm:$0xff] }
  0x40   :  { %v642_v52 = vperm.slane %v80_v51, 0  ;;  %v644_v53 = vperm.slane %v80_v51, 1  ;;  %362 = vmatpush.msrb.mxu3 %v176_v50  ;;  %303 = vmatpush.msrb.mxu0 %v107_v60  ;;  %v451_v20 = vld [vmem:[#allocation5 + $0x78] sm:$0xff]  ;;  %v446_v29 = vld [vmem:[#allocation5 + $0x50] sm:$0xff]  ;;  %v437_v50 = vld [vmem:[#allocation5 + $0x8] sm:$0xff] }
  0x41   :  { %343 = vmatpush.msrb.mxu2 %v108_v54  ;;  %323 = vmatpush.msrb.mxu1 %v171_v61  ;;  %v657_v24 = vld [vmem:[%s675_s3] sm:$0x1f]  ;;  %v442_v40 = vld [vmem:[#allocation5 + $0x30] sm:$0xff] }
  0x42   :  { %230 = vmatmul.f32.vlgmr.msra.gmra.mxu0 %v642_v52  ;;  %250 = vmatmul.f32.vlgmr.msra.gmra.mxu1 %v644_v53  ;;  %v447_v27 = vld [vmem:[#allocation5 + $0x58] sm:$0xff]  ;;  %v395_v33 = vperm.slane %v657_v24, 1  ;;  %v438_v47 = vld [vmem:[#allocation5 + $0x10] sm:$0xff]  ;;  %v420_v61 = vperm.slane %v657_v24, 3 }
  0x43   :  { %270 = vmatmul.f32.vlgmr.msra.gmra.mxu2 %v642_v52  ;;  %290 = vmatmul.f32.vlgmr.msra.gmra.mxu3 %v644_v53  ;;  %v443_v38 = vld [vmem:[#allocation5 + $0x38] sm:$0xff] }
  0x44   :  { %363 = vmatpush.msrb.mxu3 %v172_v55  ;;  %344 = vmatpush.msrb.mxu2 %v104_v58  ;;  %v439_v46 = vld [vmem:[#allocation5 + $0x18] sm:$0xff]  ;;  %v436_v55 = vld [vmem:[#allocation5] sm:$0xff] }
  0x45   :  { %304 = vmatpush.msrb.mxu0 %v103_v0  ;;  %324 = vmatpush.msrb.mxu1 %v167_v1  ;;  %v417_v0 = vperm.slane %v657_v24, 2 }
  0x46   :  { %364 = vmatpush.msrb.mxu3 %v168_v59  ;;  %345 = vmatpush.msrb.mxu2 %v100_v62 }
  0x47   :  { %305 = vmatpush.msrb.mxu0 %v99_v4  ;;  %325 = vmatpush.msrb.mxu1 %v163_v5 }
  0x48   :  { %365 = vmatpush.msrb.mxu3 %v164_v63  ;;  %346 = vmatpush.msrb.mxu2 %v96_v2 }
  0x49   :  { %306 = vmatpush.msrb.mxu0 %v95_v8  ;;  %326 = vmatpush.msrb.mxu1 %v159_v9 }
  0x4a   :  { %366 = vmatpush.msrb.mxu3 %v160_v3  ;;  %347 = vmatpush.msrb.mxu2 %v92_v6 }
  0x4b   :  { %307 = vmatpush.msrb.mxu0 %v91_v12  ;;  %327 = vmatpush.msrb.mxu1 %v155_v13 }
  0x4c   :  { %367 = vmatpush.msrb.mxu3 %v156_v7  ;;  %348 = vmatpush.msrb.mxu2 %v88_v10 }
  0x4d   :  { %308 = vmatpush.msrb.mxu0 %v87_v16  ;;  %328 = vmatpush.msrb.mxu1 %v151_v17 }
  0x4e   :  { %368 = vmatpush.msrb.mxu3 %v152_v11  ;;  %349 = vmatpush.msrb.mxu2 %v84_v14 }
  0x4f   :  { %350 = vmatmul.f32.vlgmr.msrb.gmra.mxu2 %v642_v52  ;;  %309 = vmatpush.msrb.mxu0 %v83_v18 }
  0x50   :  { %369 = vmatpush.msrb.mxu3 %v148_v15  ;;  %329 = vmatpush.msrb.mxu1 %v147_v19 }
  0x51   :  { %370 = vmatmul.f32.vlgmr.msrb.gmra.mxu3 %v644_v53  ;;  %310 = vmatmul.f32.vlgmr.msrb.gmra.mxu0 %v642_v52 }
  0x52   :  { %330 = vmatmul.f32.vlgmr.msrb.gmra.mxu1 %v644_v53  ;;  %454 = vmatpush.msra.mxu0 %v451_v20 }
  0x54   :  { %455 = vmatpush.msra.mxu0 %v450_v21  ;;  %v79_v21 = vld [vmem:[#allocation2 + $0x1] sm:$0x1] }
  0x56   :  { %456 = vmatpush.msra.mxu0 %v449_v22 }
  0x58   :  { %457 = vmatpush.msra.mxu0 %v448_v26 }
  0x5a   :  { %458 = vmatpush.msra.mxu0 %v447_v27 }
  0x5c   :  { %459 = vmatpush.msra.mxu0 %v446_v29 }
  0x5e   :  { %460 = vmatpush.msra.mxu0 %v445_v31 }
  0x60   :  { %461 = vmatpush.msra.mxu0 %v444_v34 }
  0x62   :  { %462 = vmatpush.msra.mxu0 %v443_v38 }
  0x64   :  { %463 = vmatpush.msra.mxu0 %v442_v40 }
  0x66   :  { %464 = vmatpush.msra.mxu0 %v441_v42 }
  0x68   :  { %465 = vmatpush.msra.mxu0 %v440_v45 }
  0x6a   :  { %466 = vmatpush.msra.mxu0 %v439_v46 }
  0x6c   :  { %467 = vmatpush.msra.mxu0 %v438_v47 }
  0x6e   :  { %468 = vmatpush.msra.mxu0 %v437_v50 }
  0x70   :  { %469 = vmatpush.msra.mxu0 %v436_v55 }
  0xbf   :  { %v231_v23 = vpop.f32.mrf.mxu0  ;;  %v251_v25 = vpop.f32.mrf.mxu1 }
  0xc0   :  { %v252_v28 = vadd.f32 %v251_v25, %v231_v23 }
  0xc2   :  { %v374_v30 = vadd.f32 %v252_v28, %v657_v24  ;;  %v452_v28 = vperm.slane %v657_v24, 4 }
  0xc4   :  { %v498_v32 = vmul.f32 -1.442695, %v374_v30 }
  0xc6   :  { %506 = vpow2.f32 %v498_v32  ;;  %v271_v35 = vpop.f32.mrf.mxu2  ;;  %v291_v36 = vpop.f32.mrf.mxu3 }
  0xc7   :  { %v292_v37 = vadd.f32 %v291_v36, %v271_v35 }
  0xc9   :  { %v397_v39 = vadd.f32 %v395_v33, %v292_v37 }
  0xcb   :  { %v499_v41 = vmul.f32 -1.442695, %v397_v39 }
  0xcc   :  { %v507_v43 = vpop.eup %506 }
  0xcd   :  { %v378_v44 = vadd.f32 1.0, %v507_v43  ;;  %508 = vpow2.f32 %v499_v41 }
  0xce   :  { %v311_v57 = vpop.f32.mrf.mxu0 }
  0xcf   :  { %510 = vrcp.f32 %v378_v44  ;;  %v331_v58 = vpop.f32.mrf.mxu1  ;;  %v388_v62 = vand.u32 2147483647, %v378_v44  ;;  %v390_v63 = vand.u32 2147483648, %v378_v44  ;;  %vm384_vm1 = vweird.f32 %v378_v44 }
  0xd0   :  { %v332_v2 = vadd.f32 %v331_v58, %v311_v57 }
  0xd1   :  { %vm389_vm4 = vcmp.eq.f32.partialorder %v388_v62, 8.507059e+37  ;;  %v391_v7 = vor.u32 1.1754944e-38, %v390_v63 }
  0xd2   :  { %v351_v53 = vpop.f32.mrf.mxu2  ;;  %v419_v9 = vadd.f32 %v417_v0, %v332_v2 }
  0xd3   :  { %v509_v48 = vpop.eup %508 }
  0xd4   :  { %v401_v51 = vadd.f32 1.0, %v509_v48  ;;  %v371_v54 = vpop.f32.mrf.mxu3 }
  0xd5   :  { %v511_v52 = vpop.eup %510  ;;  %v372_v59 = vadd.f32 %v371_v54, %v351_v53 }
  0xd6   :  { %512 = vrcp.f32 %v401_v51  ;;  %v380_v56 = vmul.f32 %v511_v52, %v378_v44  ;;  %vm385_vm2 = vweird.f32 %v511_v52  ;;  %vm407_vm5 = vweird.f32 %v401_v51 }
  0xd7   :  { %v422_v5 = vadd.f32 %v420_v61, %v372_v59  ;;  %vm386_vm3 = vmor %vm384_vm1, %vm385_vm2  ;;  %v413_v10 = vand.u32 2147483648, %v401_v51  ;;  %v411_v13 = vand.u32 2147483647, %v401_v51 }
  0xd8   :  { %v381_v60 = vsub.f32 1.0, %v380_v56 }
  0xd9   :  { %v414_v17 = vor.u32 1.1754944e-38, %v413_v10  ;;  %vm412_vm8 = vcmp.eq.f32.partialorder %v411_v13, 8.507059e+37 }
  0xda   :  { %v382_v1 = vmul.f32 %v511_v52, %v381_v60 }
  0xdc   :  { %v513_v3 = vpop.eup %512  ;;  %v383_v4 = vadd.f32 %v511_v52, %v382_v1 }
  0xdd   :  { %v403_v6 = vmul.f32 %v513_v3, %v401_v51  ;;  %vm408_vm6 = vweird.f32 %v513_v3 }
  0xde   :  { %v387_v8 = vsel %vm386_vm3, %v511_v52, %v383_v4  ;;  %vm409_vm7 = vmor %vm407_vm5, %vm408_vm6 }
  0xdf   :  { %v404_v11 = vsub.f32 1.0, %v403_v6  ;;  %v392_v12 = vsel %vm389_vm4, %v391_v7, %v387_v8 }
  0xe0   :  { %v423_v14 = vmul.f32 %v422_v5, %v392_v12 }
  0xe1   :  { %v405_v15 = vmul.f32 %v513_v3, %v404_v11 }
  0xe2   :  { %v424_v16 = vadd.f32 %v423_v14, %v419_v9 }
  0xe3   :  { %v406_v18 = vadd.f32 %v513_v3, %v405_v15 }
  0xe4   :  { %514 = vtanh.f32 %v424_v16 }
  0xe5   :  { %v410_v19 = vsel %vm409_vm7, %v513_v3, %v406_v18 }
  0xe6   :  { %v415_v20 = vsel %vm412_vm8, %v414_v17, %v410_v19 }
  0xe7   :  { %v426_v22 = vsub.f32 1.0, %v415_v20  ;;  %v428_v26 = vmul.f32 %v415_v20, %v79_v21 }
  0xea   :  { %v515_v23 = vpop.eup %514 }
  0xeb   :  { %v427_v25 = vmul.f32 %v515_v23, %v426_v22 }
  0xed   :  { %v429_v27 = vadd.f32 %v428_v26, %v427_v25 }
  0xef   :  { %434 = vst.msk [vmem:[#allocation2 + $0x1] sm:$0x1] %vm619_vm0, %v429_v27  ;;  %470 = vmatmul.f32.vlgmr.msra.gmra.mxu0 %v429_v27 }
  0xf0   :  { %435 = vst [vmem:[%s678_s6] sm:$0x1] %v429_v27 }
 0x16c   :  { %v471_v29 = vpop.f32.mrf.mxu0 }
 0x16d   :  { %v472_v30 = vadd.f32 %v471_v29, %v452_v28 }
 0x16f   :  { %v475_v31 = vsel %vm474_vm9, %v472_v30, -inf }
 0x170   :  { %476 = vmax.xlane.f32.xlu0 %v475_v31 }
 0x1e3   :  { %v477_v32 = vpop.xlane.xlu0 %476 }
 0x1e4   :  { %v478_v33 = vsub.f32 %v472_v30, %v477_v32 }
 0x1e6   :  { %v479_v34 = vmul.f32 1.442695, %v478_v33 }
 0x1e8   :  { %516 = vpow2.f32 %v479_v34 }
 0x1ee   :  { %v517_v35 = vpop.eup %516 }
 0x1ef   :  { %v481_v36 = vsel %vm474_vm9, %v517_v35, 0.0 }
 0x1f0   :  { %482 = vadd.xlane.f32.xlu0 %v481_v36 }
 0x263   :  { %v483_v49 = vpop.xlane.xlu0 %482 }
 0x264   :  { %518 = vlog2.f32 %v483_v49 }
 0x26a   :  { %v519_v37 = vpop.eup %518 }
 0x26b   :  { %v485_v38 = vmul.f32 0.6931472, %v519_v37 }
 0x26d   :  { %v486_v39 = vsub.f32 %v478_v33, %v485_v38 }
 0x26f   :  { %487 = vst [vmem:[%s677_s5] sm:$0x1] %v486_v39 }
 0x270   :  { %496 = vsyncpa [#allocation4], 1 }
 0x271   :  { %497 = vsyncpa [#allocation6], 1 }

</bundles_post_ra>
